<compile_context>
chip_gen: v7x
topology: tpu7x:2x2x1
jax: 0.10.0
libtpu: 0.0.40
codegen_flags: <defaults>
</compile_context>

<pallas_src>
import jax
import jax.numpy as jnp
from jax.experimental import pallas as pl
from jax.experimental.pallas import tpu as pltpu


def _round_up(x, m):
    return ((x + m - 1) // m) * m


# ---------------------------------------------------------------------------
# Pass 1: one channel-major MXU matmul per M-stripe + fused partial BN stats.
# ---------------------------------------------------------------------------
def _make_conv_stats_kernel(m_total, bm):
    def kernel(cols_ref, wt_ref, y_ref, sum_ref, ssq_ref):
        # cols_ref: (Kpad, bm)   bf16 im2col stripe (lane-dense, bm % 128 == 0)
        # wt_ref  : (Cout, Kpad) bf16 reshaped conv weight
        # y_ref   : (Cout, bm)   bf16 conv output stripe (channel-major)
        # sum_ref : (1, Cout, 1) f32 per-stripe sum over valid positions
        # ssq_ref : (1, Cout, 1) f32 per-stripe mean-shifted sum of squares
        i = pl.program_id(0)
        acc = jnp.dot(wt_ref[...], cols_ref[...],
                      preferred_element_type=jnp.float32)        # (Cout, bm) f32
        y_ref[...] = acc.astype(y_ref.dtype)

        # Mask the zero-padded tail of the last stripe so the statistics only
        # see the m_total real output positions.
        col = jax.lax.broadcasted_iota(jnp.int32, acc.shape, 1) + i * bm
        valid = col < m_total
        cnt = jnp.minimum(bm, m_total - i * bm).astype(jnp.float32)

        s = jnp.sum(acc, axis=1, keepdims=True)      # padded columns are exactly 0
        mu = s / cnt
        d = jnp.where(valid, acc - mu, 0.0)
        q = jnp.sum(d * d, axis=1, keepdims=True)    # mean-shifted SS (stable)
        sum_ref[...] = s[None]
        ssq_ref[...] = q[None]

    return kernel


# ---------------------------------------------------------------------------
# Pass 2: folded BatchNorm (y*scale + shift) + Mish on channel-major stripes.
# ---------------------------------------------------------------------------
def _bn_mish_kernel(y_ref, scale_ref, shift_ref, o_ref):
    # y_ref: (Cout, bm2) bf16, scale/shift: (Cout, 1) f32, o_ref: (Cout, bm2).
    y = y_ref[...].astype(jnp.float32) * scale_ref[...] + shift_ref[...]
    # Mish(y) = y * tanh(softplus(y)); tanh(softplus(y)) == u / (u + 2) with
    # u = e^y * (e^y + 2): one EUP exp + one divide instead of exp + log + tanh.
    t = jnp.exp(jnp.minimum(y, 20.0))        # clamp only guards overflow; y>20 => ~1
    u = t * (t + 2.0)
    o_ref[...] = (y * (u / (u + 2.0))).astype(o_ref.dtype)


def conv3d_mish(x_ncdhw, weight_oikkk, gamma, beta, *,
                stride=1, padding=0, dilation=1, groups=1,
                eps=1e-5, block_m=1024):
    """PyTorch-compatible front end: x is NCDHW, weight is (Cout,Cin,Kd,Kh,Kw)."""
    if isinstance(stride, int):
        stride = (stride,) * 3
    if isinstance(padding, int):
        padding = (padding,) * 3
    if isinstance(dilation, int):
        dilation = (dilation,) * 3
    assert groups == 1, "TODO(synk): grouped Conv3d not implemented"

    N, Cin, D, H, W = x_ncdhw.shape
    Cout, _, Kd, Kh, Kw = weight_oikkk.shape
    sd, sh, sw = stride
    pd, ph, pw = padding
    dd, dh, dw = dilation

    Do = (D + 2 * pd - dd * (Kd - 1) - 1) // sd + 1
    Ho = (H + 2 * ph - dh * (Kh - 1) - 1) // sh + 1
    Wo = (W + 2 * pw - dw * (Kw - 1) - 1) // sw + 1
    K = Kd * Kh * Kw * Cin
    M = N * Do * Ho * Wo

    # --- wrapper-side layout plumbing (channel-major im2col) -------------------
    # NCDHW -> (Cin, N, Dp, Hp, Wp) is a major-dims-only swap; each kernel tap is
    # a strided slice concatenated along the leading (tap) axis.  With
    # allow_input_fusion below, XLA may fuse this producer into pass 1's input
    # DMA instead of materializing the ~Kd*Kh*Kw x input-sized slab in HBM.
    xp = jnp.pad(x_ncdhw.astype(jnp.bfloat16),
                 ((0, 0), (0, 0), (pd, pd), (ph, ph), (pw, pw)))
    xp = jnp.transpose(xp, (1, 0, 2, 3, 4))                  # (Cin, N, Dp, Hp, Wp)
    patches = []
    for kd in range(Kd):
        for kh in range(Kh):
            for kw in range(Kw):
                patches.append(
                    xp[:, :,
                       kd * dd: kd * dd + (Do - 1) * sd + 1: sd,
                       kh * dh: kh * dh + (Ho - 1) * sh + 1: sh,
                       kw * dw: kw * dw + (Wo - 1) * sw + 1: sw]
                    .reshape(Cin, M))
    cols = jnp.concatenate(patches, axis=0)                  # (K, M), k = tap*Cin+cin

    # (Cout, Cin, Kd, Kh, Kw) -> (Cout, Kd, Kh, Kw, Cin) -> (Cout, K); matches the
    # (kd, kh, kw, cin) ordering of the im2col rows.
    wt = jnp.transpose(weight_oikkk, (0, 2, 3, 4, 1)).reshape(Cout, K)
    wt = wt.astype(jnp.bfloat16)

    # --- tile-size / VMEM budgeting --------------------------------------------
    try:
        vmem_cap = int(pltpu.get_tpu_info().vmem_capacity_bytes)
    except Exception:                       # conservative fallback (v7x-safe)
        vmem_cap = 64 * 1024 * 1024
    vmem_limit = int(min(vmem_cap * 3 // 4, 96 * 1024 * 1024))   # 48 MiB on v7x

    Kpad = _round_up(K, 128)
    # Largest M-stripe whose double-buffered bf16 im2col block fits in half the
    # VMEM budget; keep it a multiple of 128 so every block stays lane-dense.
    bm_budget = max(128, (vmem_limit // 2) // (2 * Kpad * 2) // 128 * 128)
    bm = max(128, min(block_m, bm_budget, _round_up(M, 128)) // 128 * 128)
    # Keep >= 2 stripes so the "parallel" M axis can split across v7x's 2 TCs.
    if M > 128 and pl.cdiv(M, bm) < 2:
        bm = max(128, _round_up(pl.cdiv(M, 2), 128))
    num_tiles = pl.cdiv(M, bm)
    Mpad = num_tiles * bm

    cols = jnp.pad(cols, ((0, Kpad - K), (0, Mpad - M)))     # zero pad rows/cols
    wt = jnp.pad(wt, ((0, 0), (0, Kpad - K)))

    # --- pass 1: conv matmul + per-stripe partial BN statistics -----------------
    y_conv, tile_sum, tile_ssq = pl.pallas_call(
        _make_conv_stats_kernel(M, bm),
        out_shape=(jax.ShapeDtypeStruct((Cout, Mpad), jnp.bfloat16),
                   jax.ShapeDtypeStruct((num_tiles, Cout, 1), jnp.float32),
                   jax.ShapeDtypeStruct((num_tiles, Cout, 1), jnp.float32)),
        grid=(num_tiles,),
        in_specs=[pl.BlockSpec((Kpad, bm), lambda i: (0, i)),
                  pl.BlockSpec((Cout, Kpad), lambda i: (0, 0))],
        out_specs=(pl.BlockSpec((Cout, bm), lambda i: (0, i)),
                   pl.BlockSpec((1, Cout, 1), lambda i: (i, 0, 0)),
                   pl.BlockSpec((1, Cout, 1), lambda i: (i, 0, 0))),
        compiler_params=pltpu.CompilerParams(
            dimension_semantics=("parallel",),
            vmem_limit_bytes=vmem_limit,
            allow_input_fusion=[True, False]),   # fuse im2col into the input DMA
    )(cols, wt)

    # --- tiny cross-stripe stat combine (plain JAX, Chan's stable formula) ------
    counts = jnp.asarray([min(bm, M - t * bm) for t in range(num_tiles)],
                         dtype=jnp.float32)                       # (T,)
    s_i = tile_sum[:, :, 0]                                       # (T, Cout)
    q_i = tile_ssq[:, :, 0]                                       # (T, Cout)
    mean = jnp.sum(s_i, axis=0) / M                               # (Cout,)
    mu_i = s_i / counts[:, None]
    ss = jnp.sum(q_i, axis=0) + jnp.sum(
        counts[:, None] * (mu_i - mean[None, :]) ** 2, axis=0)
    var = jnp.maximum(ss / M, 0.0)                                # biased variance
    inv = jax.lax.rsqrt(var + eps)
    g32 = gamma.astype(jnp.float32)
    scale = (g32 * inv).reshape(Cout, 1)
    shift = (beta.astype(jnp.float32) - mean * g32 * inv).reshape(Cout, 1)

    # --- pass 2: folded BN + Mish on wider stripes -------------------------------
    # Group pass-1 stripes so each pass-2 grid step moves enough bytes to
    # amortize the fixed per-step cost (still >= 2 steps when possible).
    max_cols2 = 64 * 1024
    group = 1
    for g in range(1, num_tiles + 1):
        if num_tiles % g or bm * g > max_cols2:
            continue
        if num_tiles // g >= 2 or num_tiles == 1:
            group = g
    bm2 = bm * group
    num_tiles2 = num_tiles // group

    # NOTE: input_output_aliases could reuse y_conv's buffer, but the bf16
    # intermediate dtype differs from the module's output dtype, so it is skipped.
    out2d = pl.pallas_call(
        _bn_mish_kernel,
        out_shape=jax.ShapeDtypeStruct((Cout, Mpad), x_ncdhw.dtype),
        grid=(num_tiles2,),
        in_specs=[pl.BlockSpec((Cout, bm2), lambda i: (0, i)),
                  pl.BlockSpec((Cout, 1), lambda i: (0, 0)),
                  pl.BlockSpec((Cout, 1), lambda i: (0, 0))],
        out_specs=pl.BlockSpec((Cout, bm2), lambda i: (0, i)),
        compiler_params=pltpu.CompilerParams(
            dimension_semantics=("parallel",),
            vmem_limit_bytes=vmem_limit),
    )(y_conv, scale, shift)

    # (Cout, M) -> (Cout, N, Do, Ho, Wo) -> NCDHW: major-dims-only permutation
    # (minor Do/Ho/Wo axes untouched -> no minor-dim relayout pass).
    out = out2d[:, :M].reshape(Cout, N, Do, Ho, Wo)
    return jnp.transpose(out, (1, 0, 2, 3, 4))


def _reference(x_ncdhw, weight, gamma, beta, *, stride, padding, dilation=1,
               eps=1e-5):
    """Pure-JAX reference: conv (bf16 operands, f32 accum, matching the kernel's
    MXU dtype) -> batch-stat BatchNorm -> Mish."""
    s = (stride,) * 3 if isinstance(stride, int) else stride
    p = (padding,) * 3 if isinstance(padding, int) else padding
    d = (dilation,) * 3 if isinstance(dilation, int) else dilation
    x = jnp.transpose(x_ncdhw, (0, 2, 3, 4, 1)).astype(jnp.bfloat16)   # NDHWC
    w = jnp.transpose(weight, (2, 3, 4, 1, 0)).astype(jnp.bfloat16)    # DHWIO
    y = jax.lax.conv_general_dilated(
        x, w, window_strides=s,
        padding=[(p[0], p[0]), (p[1], p[1]), (p[2], p[2])],
        rhs_dilation=d,
        dimension_numbers=("NDHWC", "DHWIO", "NDHWC"),
        preferred_element_type=jnp.float32)
    mean = jnp.mean(y, axis=(0, 1, 2, 3), keepdims=True)
    var = jnp.mean((y - mean) ** 2, axis=(0, 1, 2, 3), keepdims=True)
    yn = (y - mean) * jax.lax.rsqrt(var + eps) * gamma.reshape(1, 1, 1, 1, -1) \
        + beta.reshape(1, 1, 1, 1, -1)
    sp = jnp.maximum(yn, 0.0) + jnp.log(1.0 + jnp.exp(-jnp.abs(yn)))
    out = yn * jnp.tanh(sp)
    return jnp.transpose(out, (0, 4, 1, 2, 3)).astype(x_ncdhw.dtype)   # NCDHW


if __name__ == "__main__":
    # Conv3d_Mish(in_channels=4, out_channels=8, kernel_size=3, stride=1,
    #             padding=1)  -- bias=False, BN affine init gamma=1 / beta=0.
    N, Cin, Cout = 2, 4, 8
    D = H = W = 8
    Ksz, stride, padding = 3, 1, 1

    key = jax.random.PRNGKey(0)
    kx, kw = jax.random.split(key, 2)

    x = jax.random.normal(kx, (N, Cin, D, H, W), dtype=jnp.float32)

    fan_in = Cin * Ksz * Ksz * Ksz
    bound = 1.0 / (fan_in ** 0.5)
    weight = jax.random.uniform(kw, (Cout, Cin, Ksz, Ksz, Ksz), jnp.float32,
                                minval=-bound, maxval=bound)
    gamma = jnp.ones((Cout,), jnp.float32)    # BatchNorm3d weight init
    beta = jnp.zeros((Cout,), jnp.float32)    # BatchNorm3d bias init

    out = conv3d_mish(x, weight, gamma, beta, stride=stride, padding=padding)
    out = jax.block_until_ready(out)

    ref = jax.block_until_ready(
        _reference(x, weight, gamma, beta, stride=stride, padding=padding))

    assert out.shape == (N, Cout, D, H, W), out.shape
    # Tolerance budget is dominated by the bf16 storage of the conv intermediate
    # (values get re-normalized by batch std in pass 2).
    assert jnp.allclose(out, ref, atol=1e-2, rtol=1e-2), \
        float(jnp.max(jnp.abs(out - ref)))

    print("KERNEL_OK")
</pallas_src>

<mosaic_0001>
module attributes {stable_mosaic.version = 11 : i64} {
  func.func @kernel(%arg0: i32, %arg1: memref<128x512xbf16, #tpu.memory_space<vmem>>, %arg2: memref<8x128xbf16, #tpu.memory_space<vmem>>, %arg3: memref<8x512xbf16, #tpu.memory_space<vmem>>, %arg4: memref<1x8x1xf32, #tpu.memory_space<vmem>>, %arg5: memref<1x8x1xf32, #tpu.memory_space<vmem>>) attributes {dimension_semantics = [#tpu.dimension_semantics<parallel>], iteration_bounds = array<i64: 2>, scalar_prefetch = 0 : i64, scratch_operands = 0 : i64, tpu.core_type = #tpu.core_type<tc>, window_params = [{transform_indices = @transform_0, window_bounds = array<i64: 128, 512>}, {pipeline_mode = #tpu.pipeline_mode<synchronous>, transform_indices = @transform_1, window_bounds = array<i64: 8, 128>}, {transform_indices = @transform_2, window_bounds = array<i64: 8, 512>}, {transform_indices = @transform_3, window_bounds = array<i64: 1, 8, 1>}, {transform_indices = @transform_4, window_bounds = array<i64: 1, 8, 1>}]} {
    %c0 = arith.constant 0 : index
    %c0_0 = arith.constant 0 : index
    %0 = vector.load %arg2[%c0, %c0_0] : memref<8x128xbf16, #tpu.memory_space<vmem>>, vector<8x128xbf16>
    %c0_1 = arith.constant 0 : index
    %c0_2 = arith.constant 0 : index
    %1 = vector.load %arg1[%c0_1, %c0_2] : memref<128x512xbf16, #tpu.memory_space<vmem>>, vector<128x512xbf16>
    %cst = arith.constant dense<0.000000e+00> : vector<8x512xf32>
    %2 = tpu.matmul %0, %1, %cst {dimension_numbers = #tpu.dot_dimension_numbers<[1], [0], [0], [1], [0, 0, 1, 1], [], []>} : vector<8x128xbf16>, vector<128x512xbf16>, vector<8x512xf32> -> vector<8x512xf32>
    %3 = arith.truncf %2 : vector<8x512xf32> to vector<8x512xbf16>
    %c0_3 = arith.constant 0 : index
    %c0_4 = arith.constant 0 : index
    %4 = vector.load %arg3[%c0_3, %c0_4] : memref<8x512xbf16, #tpu.memory_space<vmem>>, vector<8x512xbf16>
    tpu.vector_store %arg3[%c0_3, %c0_4], %3 {strides = array<i32>} : memref<8x512xbf16, #tpu.memory_space<vmem>>, vector<8x512xbf16>,
    %5 = tpu.iota {dimensions = array<i32: 1>} : vector<8x512xi32>
    %c512_i32 = arith.constant 512 : i32
    %6 = arith.muli %arg0, %c512_i32 : i32
    %7 = vector.broadcast %6 : i32 to vector<8x512xi32>
    %8 = arith.addi %5, %7 : vector<8x512xi32>
    %c1024_i32 = arith.constant 1024 : i32
    %9 = vector.broadcast %c1024_i32 : i32 to vector<8x512xi32>
    %10 = arith.cmpi slt, %8, %9 : vector<8x512xi32>
    %c512_i32_5 = arith.constant 512 : i32
    %11 = arith.muli %arg0, %c512_i32_5 : i32
    %c1024_i32_6 = arith.constant 1024 : i32
    %12 = arith.subi %c1024_i32_6, %11 : i32
    %c512_i32_7 = arith.constant 512 : i32
    %13 = arith.minsi %c512_i32_7, %12 : i32
    %14 = arith.sitofp %13 : i32 to f32
    %cst_8 = arith.constant dense<0.000000e+00> : vector<8xf32>
    %15 = vector.multi_reduction <add>, %2, %cst_8 [1] : vector<8x512xf32> to vector<8xf32>
    %16 = vector.shape_cast %15 : vector<8xf32> to vector<8x1xf32>
    %17 = vector.broadcast %14 : f32 to vector<8x1xf32>
    %18 = arith.divf %16, %17 : vector<8x1xf32>
    %19 = vector.broadcast %18 : vector<8x1xf32> to vector<8x512xf32>
    %20 = arith.subf %2, %19 : vector<8x512xf32>
    %cst_9 = arith.constant 0.000000e+00 : f32
    %21 = vector.broadcast %cst_9 : f32 to vector<8x512xf32>
    %22 = arith.select %10, %20, %21 : vector<8x512xi1>, vector<8x512xf32>
    %23 = arith.mulf %22, %22 : vector<8x512xf32>
    %cst_10 = arith.constant dense<0.000000e+00> : vector<8xf32>
    %24 = vector.multi_reduction <add>, %23, %cst_10 [1] : vector<8x512xf32> to vector<8xf32>
    %25 = vector.shape_cast %24 : vector<8xf32> to vector<8x1xf32>
    %26 = vector.shape_cast %16 : vector<8x1xf32> to vector<1x8x1xf32>
    %c0_11 = arith.constant 0 : index
    %c0_12 = arith.constant 0 : index
    %c0_13 = arith.constant 0 : index
    %27 = vector.load %arg4[%c0_11, %c0_12, %c0_13] : memref<1x8x1xf32, #tpu.memory_space<vmem>>, vector<1x8x1xf32>
    tpu.vector_store %arg4[%c0_11, %c0_12, %c0_13], %26 {strides = array<i32>} : memref<1x8x1xf32, #tpu.memory_space<vmem>>, vector<1x8x1xf32>,
    %28 = vector.shape_cast %25 : vector<8x1xf32> to vector<1x8x1xf32>
    %c0_14 = arith.constant 0 : index
    %c0_15 = arith.constant 0 : index
    %c0_16 = arith.constant 0 : index
    %29 = vector.load %arg5[%c0_14, %c0_15, %c0_16] : memref<1x8x1xf32, #tpu.memory_space<vmem>>, vector<1x8x1xf32>
    tpu.vector_store %arg5[%c0_14, %c0_15, %c0_16], %28 {strides = array<i32>} : memref<1x8x1xf32, #tpu.memory_space<vmem>>, vector<1x8x1xf32>,
    return
  }
  func.func @transform_0(%arg0: i32) -> (i32, i32) {
    %c0_i32 = arith.constant 0 : i32
    %c0_i32_0 = arith.constant 0 : i32
    return %c0_i32, %arg0 : i32, i32
  }
  func.func @transform_1(%arg0: i32) -> (i32, i32) {
    %c0_i32 = arith.constant 0 : i32
    %c0_i32_0 = arith.constant 0 : i32
    %c0_i32_1 = arith.constant 0 : i32
    return %c0_i32, %c0_i32_0 : i32, i32
  }
  func.func @transform_2(%arg0: i32) -> (i32, i32) {
    %c0_i32 = arith.constant 0 : i32
    %c0_i32_0 = arith.constant 0 : i32
    return %c0_i32, %arg0 : i32, i32
  }
  func.func @transform_3(%arg0: i32) -> (i32, i32, i32) {
    %c0_i32 = arith.constant 0 : i32
    %c0_i32_0 = arith.constant 0 : i32
    %c0_i32_1 = arith.constant 0 : i32
    return %arg0, %c0_i32, %c0_i32_0 : i32, i32, i32
  }
  func.func @transform_4(%arg0: i32) -> (i32, i32, i32) {
    %c0_i32 = arith.constant 0 : i32
    %c0_i32_0 = arith.constant 0 : i32
    %c0_i32_1 = arith.constant 0 : i32
    return %arg0, %c0_i32, %c0_i32_0 : i32, i32, i32
  }
}

</mosaic_0001>

<bundles_post_ra>
// kernel: tpu_custom_call.1
= control target key start
LH: loop header
LB: loop body
LE: loop exit
PB: predicated region body
PF: predicated region fallthrough
CT: control target
= control target key end

     0   :  { %10 = vsyncpa [#allocation3], 0  ;;  %s1328_s0 = inlined_call_operand.hbm [shape: bf16[128,1024], index: 0, kind: input, shape index: {}]   ;;  %s1329_s1 = inlined_call_operand.hbm [shape: bf16[8,128], index: 1, kind: input, shape index: {}]   ;;  %s1330_s2 = inlined_call_operand.hbm [shape: bf16[8,1024], index: 2, kind: output, shape index: {0}]   ;;  %s1331_s3 = inlined_call_operand.vmem [shape: f32[2,8,1], index: 3, kind: output, shape index: {1}]   ;;  %s1332_s4 = inlined_call_operand.vmem [shape: f32[2,8,1], index: 4, kind: output, shape index: {2}]  }
   0x1   :  { %12 = vsyncpa [#allocation3 + $0x1], 0 }
   0x2   :  { %13 = vsyncpa [#allocation6], 0 }
   0x3   :  { %14 = vsyncpa [#allocation4], 0 }
   0x4   :  { %16 = vsyncpa [#allocation4 + $0x1], 0  ;;  %s1080_s15 = smov 0   ;;  %s1082_s16 = smov 0  }
   0x5   :  { %s1084_s17 = smov 0   ;;  %s1086_s18 = smov 0  }
   0x6 LB: > { %s1101_s19 = sadd.s32 4294967295, %s1046_s18   ;;  %s750_s20 = sadd.s32 4294967294, %s1046_s18   ;;  %s1046_s18 = sphi %s1086_s18, %s1357_s18   ;;  %s1042_s17 = sphi %s1084_s17, %s1356_s17   ;;  %s1038_s16 = sphi %s1082_s16, %s1355_s16   ;;  %s1034_s15 = sphi %s1080_s15, %s1354_s15  }
   0x7   : > { %s1105_s21 = sadd.s32 1, %s1046_s18   ;;  %s29_s22 = sadd.s32 1, %s1042_s17 }
   0x8   : > { %s26_s23 = ssub.s32 %s1046_s18, %s1105_s21  ;;  %p36_p0 = scmp.ne.s32.totalorder %s1042_s17, %s1038_s16 }
   0x9   : > { %p27_p1 = scmp.eq.s32.totalorder %s26_s23, 0  ;;  %p37_p2 = scmp.eq.s32.totalorder %s1046_s18, 0 }
   0xa   : > { %p42_p3 = scmp.ne.s32.totalorder %s1038_s16, %s1034_s15  ;;  %p1333_p4 = scmp.eq.s32.totalorder %s1101_s19, 0 }
   0xb   : > { %s1117_s24 = scalar_select %p27_p1, %s1042_s17, %s29_s22  }
   0xc   : > { %p1119_p5 = por %p37_p2, %p36_p0  ;;  %p1125_p6 = por %p1333_p4, %p42_p3 }
   0xd   : > { %p87_p7 = scmp.eq.s32.totalorder %s1101_s19, 1  ;;  %p93_p8 = scmp.eq.s32.totalorder %s750_s20, 1 }
   0xe   : > { %s1339_s26 = scalar_select %p1125_p6, 1, 0 }
   0xf   : > { %p751_p9 = scmp.ge.s32.totalorder %s1046_s18, 1  ;;  %p152_p10 = scmp.lt.s32.totalorder %s1046_s18, 3 }
  0x10   : > { %p1132_p11 = por %p87_p7, %p36_p0  ;;  %p1136_p12 = por %p93_p8, %p42_p3 }
  0x11   : > { %p1140_p13 = pnand %p751_p9, %p152_p10  ;;  %s1048_s30 = smov [#allocation5]  }
  0x12   : > { %s1340_s27 = scalar_select %p1132_p11, 1, 0 }
  0x13   : > { %s1341_s28 = scalar_select %p1136_p12, 1, 0 }
  0x14   : > { %s1342_s29 = scalar_select %p1140_p13, 1, 0 }
  0x15   : > { %p815_p2 = pneg %p1140_p13  ;;  %s165_s5 = sshll.u32 %s1048_s30, 4  ;;  %s166_s5 = int_to_ptr.vmem [resolvable:$true] %s165_s5 }
  0x16   : > { %p828_p4 = scmp.lt.s32.totalorder %s1046_s18, 2  ;;  %p1343_p0 = scmp.eq.s32.totalorder %s1101_s19, 0 }
  0x17   : > { %s176_s7 = sand.u32 1, %s1042_s17   ;;  %s918_s12 = scalar_lea.hbm %s1329_s1, 64 }
  0x18   : > { %p1150_p7 = pnand %p815_p2, %p1343_p0  ;;  %p1157_p3 = pnand %p828_p4, %p1119_p5 }
  0x19   : > { %s754_s9 = sshll.u32 %s176_s7, 8  ;;  %p919_p8 = scmp.ne.s32.totalorder %s1329_s1, %s918_s12 }
  0x1a   : > { %s1345_s8 = scalar_select %p1157_p3, 1, 0 }
  0x1b   : > { %p920_p9 = pneg %p1150_p7  ;;  %p925_p4 = scmp.lt.u32.totalorder %s918_s12, %s1329_s1 }
  0x1d   : > { %p921_p10 = pnand %p920_p9, %p919_p8 }
  0x1f   : > { %p922_p2 = pneg %p921_p10 }
  0x21   : > { %p927_p5 = pnand %p925_p4, %p922_p2 }
  0x23   : > { %930 = shalt.err (!%p927_p5)
}
  0x24   : > { %s931_s23 = scalar_lea.vmem %s166_s5, 64  ;;  %p939_p11 = scmp.lt.s32.totalorder %s166_s5, %s166_s5 }
  0x25   : > { %p932_p0 = scmp.ne.s32.totalorder %s166_s5, %s931_s23  ;;  %p940_p6 = scmp.lt.s32.totalorder %s931_s23, %s931_s23 }
  0x27   : > { %p934_p1 = pnand %p932_p0, %p920_p9  ;;  %p941_p13 = por %p940_p6, %p939_p11 }
  0x29   : > { %p935_p12 = pneg %p934_p1 }
  0x2b   : > { %p942_p3 = pnand %p941_p13, %p935_p12 }
  0x2d   : > { %945 = shalt.err (!%p942_p3)
}
  0x2e   : > { %818 = dma.hbm_to_vmem [thread:$0]  (!%p1150_p7), %s1329_s1, 64, %s166_s5, [#allocation6]  }
  0x2f   : > { %s803_s10 = sshll.u32 %s1046_s18, 8  ;;  %s180_s11 = scalar_lea.vmem [#allocation2], %s754_s9 }
  0x30   : > { %s187_s12 = sshll.u32 %s180_s11, 4  ;;  %s1181_s20 = scalar_lea.hbm %s1328_s0, %s803_s10  ;;  %s1183_s12 = int_to_ptr.vmem [resolvable:$true] %s187_s12 }
  0x31   : > { %s1185_s6 = scalar_lea.sflag [#allocation3], %s176_s7  ;;  %s946_s22 = scalar_lea.hbm %s1181_s20, 4096 }
  0x32   : > { %p947_p6 = scmp.ne.s32.totalorder %s1181_s20, %s946_s22  ;;  %p1346_p11 = scmp.ne.s32.totalorder %s1345_s8, 0 }
  0x33   : > { %s951_s23 = scalar_lea.hbm %s1328_s0, 8192  ;;  %p952_p7 = scmp.lt.u32.totalorder %s1181_s20, %s1328_s0 }
  0x34   : > { %p948_p12 = pneg %p1346_p11  ;;  %p953_p3 = scmp.lt.u32.totalorder %s951_s23, %s946_s22 }
  0x35   : > { %p955_p9 = scmp.lt.u32.totalorder %s946_s22, %s1181_s20 }
  0x36   : > { %p949_p13 = pnand %p948_p12, %p947_p6  ;;  %p954_p8 = por %p953_p3, %p952_p7 }
  0x38   : > { %p950_p1 = pneg %p949_p13  ;;  %p956_p10 = por %p955_p9, %p954_p8 }
  0x3a   : > { %p957_p2 = pnand %p956_p10, %p950_p1 }
  0x3c   : > { %960 = shalt.err (!%p957_p2)
}
  0x3d   : > { %s961_s7 = scalar_lea.vmem %s1183_s12, 4096  ;;  %s1049_s10 = smov [#allocation2]  }
  0x3e   : > { %p962_p4 = scmp.ne.s32.totalorder %s1183_s12, %s961_s7  ;;  %s966_s11 = sshll.u32 %s1049_s10, 4  ;;  %s967_s11 = int_to_ptr.vmem [resolvable:$false] %s966_s11 }
  0x3f   : > { %s968_s13 = scalar_lea.vmem %s967_s11, 8192  ;;  %p969_p6 = scmp.lt.s32.totalorder %s1183_s12, %s967_s11 }
  0x40   : > { %p964_p5 = pnand %p962_p4, %p948_p12  ;;  %p970_p13 = scmp.lt.s32.totalorder %s968_s13, %s961_s7 }
  0x42   : > { %p965_p0 = pneg %p964_p5  ;;  %p971_p7 = por %p970_p13, %p969_p6 }
  0x44   : > { %p972_p3 = pnand %p971_p7, %p965_p0 }
  0x46   : > { %975 = shalt.err (!%p972_p3)
}
  0x47   : > { %s1050_s14 = smov 512   ;;  %s1051_s22 = smov 256  }
  0x48   : > { %s1052_s5 = smov 16   ;;  %p1347_p12 = scmp.ne.s32.totalorder %s1342_s29, 0 }
  0x49   : > { %822 = dma.hbm_to_vmem [thread:$0]  (!%p1346_p11), %s1181_s20, 4096, %s1183_s12, %s1185_s6, %s1050_s14, %s1051_s22, %s1052_s5  }
  0x4a   : > { %199 = sbr.rel (%p1347_p12) target bundleno = 636 (0x27c), region = 28  ;;  %s1216_s9 = sand.u32 (!%p1347_p12), 1, %s1038_s16  }
  0x4b   : > { %s758_s23 = sshll.u32 (!%p1347_p12), %s1216_s9, 8  ;;  %s202_s25 = scalar_lea.sflag (!%p1347_p12), [#allocation3], %s1216_s9 }
  0x4c   : > { %s1220_s30 = scalar_lea.vmem (!%p1347_p12), [#allocation2], %s758_s23  ;;  %p1348_p1 = scmp.ne.s32.totalorder (!%p1347_p12), %s1339_s26, 0 }
  0x51   : > { %1021 = dma.done.wait (%p1348_p1), %s202_s25, 4096  }
  0x52   : > { %1023 = vsyncadd (%p1348_p1), %s202_s25, 4294963200  ;;  %p1349_p11 = scmp.eq.s32.totalorder %s1101_s19, 0 }
  0x54   : > { %1025 = dma.done.wait (%p1349_p11), [#allocation6], 64   ;;  %p1350_p8 = pmov %p1349_p11 }
  0x55   : > { %v1053_v0 = vmov 0   ;;  %v868_v1 = vld [vmem:[%s1220_s30 + $0x4] ss:$16 sps:$4 sm:$0xff]   ;;  %v870_v2 = vld [vmem:[%s1220_s30 + $0xc] ss:$16 sps:$4 sm:$0xff]   ;;  %s760_s26 = sshll.u32 %s1216_s9, 4  ;;  %v546_v48 = vlaneseq }
  0x56   : > { %1027 = vsyncadd (%p1350_p8), [#allocation6], 4294967232  ;;  %478 = vmatprep.mubr.bf16.mxu0 %v1053_v0  ;;  %519 = vmatprep.mubr.bf16.mxu1 %v1053_v0  ;;  %v872_v3 = vld [vmem:[%s1220_s30] ss:$16 sps:$4 sm:$0xff]   ;;  %v873_v4 = vld [vmem:[%s1220_s30 + $0x8] ss:$16 sps:$4 sm:$0xff]  }
  0x57   : > { %446 = vmatprep.subr.bf16.mxu0 %v868_v1  ;;  %487 = vmatprep.subr.bf16.mxu1 %v870_v2  ;;  %v874_v5 = vld [vmem:[%s1220_s30 + $0x24] ss:$16 sps:$4 sm:$0xff]   ;;  %v876_v6 = vld [vmem:[%s1220_s30 + $0x2c] ss:$16 sps:$4 sm:$0xff]   ;;  %v878_v7 = vld [vmem:[%s1220_s30 + $0x20] ss:$16 sps:$4 sm:$0xff]  }
  0x58   : > { %447 = vmatpush1.bf16.msra.mxu0 %v872_v3  ;;  %488 = vmatpush1.bf16.msra.mxu1 %v873_v4  ;;  %v879_v8 = vld [vmem:[%s1220_s30 + $0x28] ss:$16 sps:$4 sm:$0xff]   ;;  %v880_v9 = vld [vmem:[%s1220_s30 + $0x44] ss:$16 sps:$4 sm:$0xff]   ;;  %v882_v10 = vld [vmem:[%s1220_s30 + $0x4c] ss:$16 sps:$4 sm:$0xff]  }
  0x59   : > { %448 = vmatprep.subr.bf16.mxu0 %v874_v5  ;;  %489 = vmatprep.subr.bf16.mxu1 %v876_v6  ;;  %v884_v11 = vld [vmem:[%s1220_s30 + $0x40] ss:$16 sps:$4 sm:$0xff]   ;;  %v885_v12 = vld [vmem:[%s1220_s30 + $0x48] ss:$16 sps:$4 sm:$0xff]   ;;  %v886_v13 = vld [vmem:[%s1220_s30 + $0x64] ss:$16 sps:$4 sm:$0xff]  }
  0x5a   : > { %v888_v14 = vld [vmem:[%s1220_s30 + $0x6c] ss:$16 sps:$4 sm:$0xff]   ;;  %v890_v15 = vld [vmem:[%s1220_s30 + $0x60] ss:$16 sps:$4 sm:$0xff]   ;;  %v891_v16 = vld [vmem:[%s1220_s30 + $0x68] ss:$16 sps:$4 sm:$0xff]  }
  0x5b   : > { %v892_v17 = vld [vmem:[%s1220_s30 + $0x84] ss:$16 sps:$4 sm:$0xff]   ;;  %v894_v18 = vld [vmem:[%s1220_s30 + $0x8c] ss:$16 sps:$4 sm:$0xff]   ;;  %v896_v19 = vld [vmem:[%s1220_s30 + $0x80] ss:$16 sps:$4 sm:$0xff]  }
  0x5c   : > { %449 = vmatpush1.bf16.msra.mxu0 %v878_v7  ;;  %490 = vmatpush1.bf16.msra.mxu1 %v879_v8  ;;  %v897_v20 = vld [vmem:[%s1220_s30 + $0x88] ss:$16 sps:$4 sm:$0xff]   ;;  %v898_v21 = vld [vmem:[%s1220_s30 + $0xa4] ss:$16 sps:$4 sm:$0xff]   ;;  %v900_v22 = vld [vmem:[%s1220_s30 + $0xac] ss:$16 sps:$4 sm:$0xff]  }
  0x5d   : > { %450 = vmatprep.subr.bf16.mxu0 %v880_v9  ;;  %491 = vmatprep.subr.bf16.mxu1 %v882_v10  ;;  %v902_v23 = vld [vmem:[%s1220_s30 + $0xa0] ss:$16 sps:$4 sm:$0xff]   ;;  %v903_v24 = vld [vmem:[%s1220_s30 + $0xa8] ss:$16 sps:$4 sm:$0xff]   ;;  %v904_v25 = vld [vmem:[%s1220_s30 + $0xc4] ss:$16 sps:$4 sm:$0xff]  }
  0x5e   : > { %v906_v26 = vld [vmem:[%s1220_s30 + $0xcc] ss:$16 sps:$4 sm:$0xff]   ;;  %v908_v27 = vld [vmem:[%s1220_s30 + $0xc0] ss:$16 sps:$4 sm:$0xff]   ;;  %v909_v28 = vld [vmem:[%s1220_s30 + $0xc8] ss:$16 sps:$4 sm:$0xff]  }
  0x5f   : > { %v910_v29 = vld [vmem:[%s1220_s30 + $0xe4] ss:$16 sps:$4 sm:$0xff]   ;;  %v912_v30 = vld [vmem:[%s1220_s30 + $0xec] ss:$16 sps:$4 sm:$0xff]   ;;  %v914_v31 = vld [vmem:[%s1220_s30 + $0xe0] ss:$16 sps:$4 sm:$0xff]  }
  0x60   : > { %451 = vmatpush1.bf16.msra.mxu0 %v884_v11  ;;  %492 = vmatpush1.bf16.msra.mxu1 %v885_v12  ;;  %v915_v32 = vld [vmem:[%s1220_s30 + $0xe8] ss:$16 sps:$4 sm:$0xff]   ;;  %v253_v33 = vld [vmem:[#allocation5] sm:$0xf]  ;;  %s1263_s29 = scalar_lea.vmem [#allocation7], %s760_s26  ;;  %s797_s8 = sshll.u32 %s1101_s19, 9 }
  0x61   : > { %452 = vmatprep.subr.bf16.mxu0 %v886_v13  ;;  %493 = vmatprep.subr.bf16.mxu1 %v888_v14  ;;  %s561_s12 = ssub.s32 1024, %s797_s8  ;;  %p244_p10 = scmp.lt.s32.totalorder %s1101_s19, 1  ;;  %v547_v49 = vand.u32 127, %v546_v48  ;;  %v552_v52 = vstv %s797_s8  ;;  %vm590_vm0 = vcmask 7168  }
  0x62   : > { %p562_p9 = scmp.lt.s32.totalorder %s561_s12, 512  ;;  %s806_s14 = sshll.u32 %s1101_s19, 8 }
  0x63   : > { %s1270_s6 = scalar_select %p244_p10, %s1101_s19, 1  ;;  %v548_v50 = vadd.s32 128, %v547_v49  ;;  %v549_v51 = vadd.s32 256, %v547_v49  ;;  %v550_v53 = vadd.s32 384, %v547_v49  ;;  %v553_v55 = vadd.s32 %v552_v52, %v547_v49 }
  0x64   : > { %453 = vmatpush1.bf16.msra.mxu0 %v890_v15  ;;  %494 = vmatpush1.bf16.msra.mxu1 %v891_v16  ;;  %s1359_s12 = smov (!%p562_p9, %s561_s12), 512  ;;  %s616_s22 = sshll.u32 %s1263_s29, 4  ;;  %s617_s22 = int_to_ptr.vmem [resolvable:$true] %s616_s22 }
  0x65   : > { %454 = vmatprep.subr.bf16.mxu0 %v892_v17  ;;  %495 = vmatprep.subr.bf16.mxu1 %v894_v18  ;;  %s564_s20 = scvt.s32.f32 %s1359_s12  ;;  %s761_s7 = sshll.u32 %s1270_s6, 3  ;;  %v554_v56 = vadd.s32 %v552_v52, %v548_v50  ;;  %v555_v57 = vadd.s32 %v552_v52, %v549_v51  ;;  %v556_v59 = vadd.s32 %v552_v52, %v550_v53  ;;  %vm557_vm1 = vcmp.lt.s32.totalorder %v553_v55, 1024 }
  0x66   : > { %s247_s13 = scalar_lea.vmem %s1331_s3, %s761_s7  ;;  %s1284_s25 = scalar_lea.hbm %s1330_s2, %s806_s14 }
  0x67   : > { %v570_v47 = vstv %s564_s20  ;;  %vm558_vm2 = vcmp.lt.s32.totalorder %v554_v56, 1024  ;;  %vm559_vm3 = vcmp.lt.s32.totalorder %v555_v57, 1024  ;;  %vm560_vm4 = vcmp.lt.s32.totalorder %v556_v59, 1024  ;;  %s594_s30 = scalar_lea.sflag [#allocation4], %s1216_s9  ;;  %s976_s26 = scalar_lea.vmem %s617_s22, 256 }
  0x68   : > { %455 = vmatpush1.bf16.msra.mxu0 %v896_v19  ;;  %496 = vmatpush1.bf16.msra.mxu1 %v897_v20  ;;  %916 = vrcp.f32 %v570_v47  ;;  %p977_p2 = scmp.ne.s32.totalorder %s617_s22, %s976_s26  ;;  %p1351_p4 = scmp.ne.s32.totalorder %s1340_s27, 0 }
  0x69   : > { %456 = vmatprep.subr.bf16.mxu0 %v898_v21  ;;  %497 = vmatprep.subr.bf16.mxu1 %v900_v22  ;;  %s1054_s8 = smov [#allocation7]  }
  0x6a   : > { %p978_p5 = pnand %p977_p2, %p1351_p4  ;;  %s980_s12 = sshll.u32 %s1054_s8, 4  ;;  %s981_s12 = int_to_ptr.vmem [resolvable:$false] %s980_s12 }
  0x6b   : > { %s982_s20 = scalar_lea.vmem %s981_s12, 512  ;;  %p983_p6 = scmp.lt.s32.totalorder %s617_s22, %s981_s12 }
  0x6c   : > { %457 = vmatpush1.bf16.msra.mxu0 %v902_v23  ;;  %498 = vmatpush1.bf16.msra.mxu1 %v903_v24  ;;  %p979_p0 = pneg %p978_p5  ;;  %p984_p13 = scmp.lt.s32.totalorder %s982_s20, %s976_s26 }
  0x6d   : > { %458 = vmatprep.subr.bf16.mxu0 %v904_v25  ;;  %499 = vmatprep.subr.bf16.mxu1 %v906_v26 }
  0x6e   : > { %p985_p7 = por %p984_p13, %p983_p6 }
  0x70   : > { %459 = vmatpush1.bf16.msra.mxu0 %v908_v27  ;;  %500 = vmatpush1.bf16.msra.mxu1 %v909_v28  ;;  %p986_p3 = pnand %p985_p7, %p979_p0 }
  0x71   : > { %460 = vmatprep.subr.bf16.mxu0 %v910_v29  ;;  %501 = vmatprep.subr.bf16.mxu1 %v912_v30 }
  0x72   : > { %v917_v54 = vpop.eup %916 }
  0x74   : > { %461 = vmatpush1.bf16.msra.mxu0 %v914_v31  ;;  %502 = vmatpush1.bf16.msra.mxu1 %v915_v32 }
  0x77   : > { %479 = vmatmul.mubr.bf16.vlgmr.msra.gmra.mrb[0].mxu0 %v253_v33  ;;  %520 = vmatmul.mubr.bf16.vlgmr.msra.gmra.mrb[0].mxu1 %v253_v33 }
 0x14a   : > { %v480_v34 = vpop.f32.mrb[0].mxu0  ;;  %v521_v35 = vpop.f32.mrb[0].mxu1 }
 0x14b   : > { %v482_v36 = vpop.f32.mrb[1].mxu0  ;;  %v523_v37 = vpop.f32.mrb[1].mxu1 }
 0x14c   : > { %v804_v38 = vpack.c.bf16 %v482_v36, %v480_v34  ;;  %v565_v39 = vadd.f32 %v482_v36, %v480_v34  ;;  %v805_v40 = vpack.c.bf16 %v523_v37, %v521_v35  ;;  %v484_v41 = vpop.f32.mrb[2].mxu0  ;;  %v525_v42 = vpop.f32.mrb[2].mxu1 }
 0x14d   : > { %v485_v43 = vpop.f32.mrb[3].mxu0  ;;  %v526_v44 = vpop.f32.mrb[3].mxu1 }
 0x14e   : > { %544 = vst [vmem:[%s1263_s29] sm:$0xff] %v804_v38  ;;  %545 = vst [vmem:[%s1263_s29 + $0x8] sm:$0xff] %v805_v40  ;;  %v566_v45 = vadd.f32 %v565_v39, %v521_v35 }
 0x150   : > { %v567_v46 = vadd.f32 %v566_v45, %v523_v37 }
 0x152   : > { %568 = vadd.xlane.f32.xlu0 %v567_v46 }
 0x1df   : > { %v569_v58 = vpop.xlane.xlu0 %568 }
 0x1e0   : > { %v572_v60 = vmul.f32 %v917_v54, %v569_v58  ;;  %591 = vst.msk [vmem:[%s247_s13] sm:$0xff] %vm590_vm0, %v569_v58 }
 0x1e2   : > { %v573_v61 = vsub.f32 %v480_v34, %v572_v60  ;;  %v574_v62 = vsub.f32 %v482_v36, %v572_v60  ;;  %v575_v63 = vsub.f32 %v521_v35, %v572_v60  ;;  %v576_v0 = vsub.f32 %v523_v37, %v572_v60 }
 0x1e4   : > { %v577_v1 = vsel %vm557_vm1, %v573_v61, 0.0  ;;  %v578_v2 = vsel %vm558_vm2, %v574_v62, 0.0  ;;  %v579_v3 = vsel %vm559_vm3, %v575_v63, 0.0  ;;  %v580_v6 = vsel %vm560_vm4, %v576_v0, 0.0 }
 0x1e5   : > { %v581_v4 = vmul.f32 %v577_v1, %v577_v1  ;;  %v582_v5 = vmul.f32 %v578_v2, %v578_v2  ;;  %v583_v7 = vmul.f32 %v579_v3, %v579_v3  ;;  %v584_v9 = vmul.f32 %v580_v6, %v580_v6 }
 0x1e7   : > { %v585_v8 = vadd.f32 %v582_v5, %v581_v4 }
 0x1e9   : > { %v586_v10 = vadd.f32 %v585_v8, %v583_v7 }
 0x1eb   : > { %v587_v11 = vadd.f32 %v586_v10, %v584_v9 }
 0x1ed   : > { %588 = vadd.xlane.f32.xlu0 %v587_v11 }
 0x1ee   : > { %989 = shalt.err (!%p986_p3)
}
 0x1ef   : > { %s990_s19 = scalar_lea.hbm %s1284_s25, 256  ;;  %s994_s10 = scalar_lea.hbm %s1330_s2, 512 }
 0x1f0   : > { %p991_p12 = scmp.ne.s32.totalorder %s1284_s25, %s990_s19  ;;  %p995_p8 = scmp.lt.u32.totalorder %s1284_s25, %s1330_s2 }
 0x1f1   : > { %p996_p9 = scmp.lt.u32.totalorder %s994_s10, %s990_s19  ;;  %p998_p2 = scmp.lt.u32.totalorder %s990_s19, %s1284_s25 }
 0x1f2   : > { %p992_p1 = pnand %p991_p12, %p1351_p4 }
 0x1f3   : > { %p997_p10 = por %p996_p9, %p995_p8 }
 0x1f4   : > { %p993_p11 = pneg %p992_p1 }
 0x1f5   : > { %p999_p5 = por %p998_p2, %p997_p10 }
 0x1f7   : > { %p1000_p0 = pnand %p999_p5, %p993_p11 }
 0x1f9   : > { %1003 = shalt.err (!%p1000_p0)
}
 0x1fa   : > { %813 = dma.vmem_to_hbm [thread:$0]  (%p1351_p4), %s617_s22, 256, %s1284_s25, %s594_s30  }
 0x1fb   : > { %s251_s23 = scalar_lea.vmem %s1332_s4, %s761_s7 }
 0x27a   : > { %v589_v12 = vpop.xlane.xlu0 %588 }
 0x27b   : > { %592 = vst.msk [vmem:[%s251_s23] sm:$0xff] %vm590_vm0, %v589_v12 }
 0x27c PF: > { %s634_s26 = sand.u32 1, %s1034_s15   ;;  %p1352_p6 = scmp.ne.s32.totalorder %s1341_s28, 0 }
 0x27d   : > { %p1353_p13 = scmp.ge.s32.totalorder %s1046_s18, 2  ;;  %s635_s27 = scalar_lea.sflag [#allocation4], %s634_s26 }
 0x27f   : > { %p824_p7 = pnand %p1353_p13, %p1352_p6 }
 0x281   : > { %1029 = dma.done.wait (!%p824_p7), %s635_s27, 256  }
 0x282   : > { %1031 = vsyncadd (!%p824_p7), %s635_s27, 4294967040  ;;  %p19_p4 = scmp.ge.s32.totalorder %s1105_s21, 4   ;;  %s1354_s15 = smov %s1038_s16 }
 0x283   : > { %s1355_s16 = smov %s1042_s17  ;;  %s1356_s17 = smov %s1117_s24 }
 0x284   : > { %s1357_s18 = smov %s1105_s21  ;;  %21 = sbr.rel (!%p19_p4) target bundleno = 6 (0x6), region = 101 }
 0x28b   :  { %654 = vsyncpa [#allocation3], 1 }
 0x28c   :  { %656 = vsyncpa [#allocation3 + $0x1], 1 }
 0x28d   :  { %657 = vsyncpa [#allocation6], 1 }
 0x28e   :  { %658 = vsyncpa [#allocation4], 1 }
 0x28f   :  { %660 = vsyncpa [#allocation4 + $0x1], 1 }

</bundles_post_ra>
